<compile_context>
chip_gen: v6e
topology: v6e:2x2x1
jax: 0.10.0
libtpu: 0.0.40
codegen_flags: <defaults>
</compile_context>

<pallas_src>
import jax
import jax.numpy as jnp
from jax.experimental import pallas as pl
from jax.experimental.pallas import tpu as pltpu


def _cdiv(a, b):
    return -(-a // b)


def _round_up(a, b):
    return _cdiv(a, b) * b


def _vmem_capacity_bytes():
    """Best-effort physical VMEM query; falls back to the smallest (v7x) size."""
    try:
        info = pltpu.get_tpu_info()
        cap = getattr(info, "vmem_capacity_bytes", None)
        if cap:
            return int(cap)
    except Exception:
        pass
    return 64 * 1024 * 1024  # conservative: v7x per-TensorCore VMEM


def _make_cls_loss_kernel(BH, bht, gi, G):
    def kernel(cls_ref, k_ref, ssq_ref):
        # cls_ref: (bht, D) f32   k_ref: (bht, N, D)   ssq_ref: (1, 8, 128) f32
        pi = pl.program_id(0)
        g = pl.program_id(1)
        blk = pi * gi + g

        @pl.when(g == 0)
        def _init():
            ssq_ref[...] = jnp.zeros_like(ssq_ref)

        # Overhanging grid steps (blk >= G, only possible in the last parallel
        # chunk) are skipped; their block index is clamped in the index_map.
        @pl.when(blk < G)
        def _accum():
            c = cls_ref[...][:, None, :]                 # (bht, 1, D) f32
            kt = k_ref[...].astype(jnp.float32)          # (bht, N, D) f32
            d = kt - c                                   # broadcast over tokens

            row0 = blk * bht

            # Fast path: every row of this block is a real (< BH) row.
            @pl.when(row0 + bht <= BH)
            def _full():
                ssq_ref[...] = ssq_ref[...] + jnp.sum(d * d)

            # Tail block: rows >= BH hold garbage from the padded DMA window —
            # zero them before squaring (runs for at most one block per chunk).
            @pl.when(row0 + bht > BH)
            def _tail():
                rid = jax.lax.broadcasted_iota(jnp.int32, d.shape, 0) + row0
                dm = jnp.where(rid < BH, d, 0.0)
                ssq_ref[...] = ssq_ref[...] + jnp.sum(dm * dm)

    return kernel


def cls_loss(q, k, *, max_block_rows=None):
    """Pallas implementation of clsLoss.forward((q, k)) -> scalar loss (f32)."""
    B, H, N, D = q.shape
    assert k.shape == (B, H, N, D)
    assert N >= 2, "need at least one non-cls token"
    BH = B * H

    # Only the cls row of q is needed; upcast to f32 in the wrapper (tiny).
    cls_f32 = q[:, :, 0, :].astype(jnp.float32)          # (B, H, D)
    cls2d = cls_f32.reshape(BH, D)                       # (BH, D) f32
    kf = k.reshape(BH, N, D)

    # ---- generation-aware VMEM budgets -------------------------------------
    cap = _vmem_capacity_bytes()
    if cap >= 100 * (1 << 20):       # v5e / v6e: 128 MiB VMEM
        k_budget = 24 << 20
        vmem_limit = 100 << 20
    else:                            # v7x: 64 MiB per TensorCore
        k_budget = 10 << 20
        vmem_limit = 48 << 20

    # ---- padded per-row footprint of a k block -----------------------------
    itemsize = jnp.dtype(k.dtype).itemsize
    packing = max(1, 4 // itemsize)          # elems per 32-bit word (f32:1, bf16:2)
    d_pad = _round_up(D, 128)                # lane padding
    n_pad = _round_up(N, 8 * packing)        # sublane padding
    k_row_bytes = n_pad * d_pad * itemsize
    # cls block footprint (~bht * d_pad * 4B) is negligible next to the k block;
    # the vmem_limit headroom covers it plus any f32 upcast temporaries.
    rows_fit = max(8, k_budget // k_row_bytes)
    if max_block_rows is not None:
        rows_fit = max(1, min(rows_fit, max_block_rows))

    # ---- cdiv tiling over the fused B*H axis --------------------------------
    p_target = 2 if BH > 8 else 1            # 2 chunks -> both v7x TCs get work
    if BH <= 8:
        bht = BH                             # single block == full array dim
    else:
        bht = max(8, (min(rows_fit, _cdiv(BH, p_target)) // 8) * 8)
    G = _cdiv(BH, bht)                       # real blocks over BH
    p = p_target if G >= 2 else 1            # outer "parallel" chunks
    gi = _cdiv(G, p)                         # inner accumulation steps per chunk

    kernel = _make_cls_loss_kernel(BH, bht, gi, G)

    def _blk(pi, g):
        # Clamp so overhanging steps re-point at the last real block (skipped
        # in-kernel) instead of issuing a fully out-of-range DMA window.
        return jnp.minimum(pi * gi + g, G - 1)

    ssq = pl.pallas_call(
        kernel,
        out_shape=jax.ShapeDtypeStruct((p, 8, 128), jnp.float32),
        grid_spec=pltpu.PrefetchScalarGridSpec(
            num_scalar_prefetch=0,
            grid=(p, gi),
            in_specs=[
                pl.BlockSpec((bht, D), lambda pi, g: (_blk(pi, g), 0)),
                pl.BlockSpec((bht, N, D), lambda pi, g: (_blk(pi, g), 0, 0)),
            ],
            out_specs=pl.BlockSpec((1, 8, 128), lambda pi, g: (pi, 0, 0)),
        ),
        compiler_params=pltpu.CompilerParams(
            dimension_semantics=("parallel", "arbitrary"),
            vmem_limit_bytes=vmem_limit,
        ),
    )(cls2d, kf)

    ssq_total = jnp.sum(ssq[:, 0, 0])

    # Token-0 correction: the kernel summed over all N tokens; remove the cls
    # token's own contribution (pure JAX, only BH*D elements).
    k0_f32 = k[:, :, 0, :].astype(jnp.float32)
    corr = jnp.sum((k0_f32 - cls_f32) ** 2)

    n_elem = BH * (N - 1) * D
    return (ssq_total - corr) / n_elem


if __name__ == "__main__":
    def ref_loss(q, k):
        cls = q[:, :, :1, :].astype(jnp.float32)
        kk = k[:, :, 1:, :].astype(jnp.float32)
        return jnp.mean((kk - cls) ** 2)

    key = jax.random.PRNGKey(0)

    # Shapes follow the module's implicit constraint D == N - 1 (from the dead
    # `cls @ k`), though the loss itself does not need it.
    cases = [
        # (B, H, N, D, dtype, max_block_rows)
        (2, 4, 17, 16, jnp.float32, None),   # BH=8: single block, p=1
        (2, 8, 17, 16, jnp.float32, None),   # BH=16: p=2, one block per chunk
        (5, 8, 17, 16, jnp.float32, 8),      # BH=40: p=2, multi-step accumulation
        (3, 3, 17, 16, jnp.float32, None),   # BH=9: partial tail block -> row mask
        (2, 8, 17, 16, jnp.bfloat16, 8),     # bf16 inputs, in-kernel f32 upcast
    ]
    for (B, H, N, D, dt, mbr) in cases:
        kq, kk_, key = jax.random.split(key, 3)
        q = jax.random.normal(kq, (B, H, N, D), dtype=jnp.float32).astype(dt)
        k = jax.random.normal(kk_, (B, H, N, D), dtype=jnp.float32).astype(dt)
        out = jax.block_until_ready(cls_loss(q, k, max_block_rows=mbr))
        ref = ref_loss(q, k)
        assert jnp.allclose(out, ref, rtol=2e-5, atol=1e-6), (
            (B, H, N, D, str(dt), mbr), float(out), float(ref))

    print("KERNEL_OK")
</pallas_src>

<mosaic_0001>
module attributes {stable_mosaic.version = 11 : i64} {
  func.func @kernel(%arg0: i32, %arg1: i32, %arg2: memref<8x16xf32, #tpu.memory_space<vmem>>, %arg3: memref<8x17x16xf32, #tpu.memory_space<vmem>>, %arg4: memref<1x8x128xf32, #tpu.memory_space<vmem>>) attributes {dimension_semantics = [#tpu.dimension_semantics<parallel>, #tpu.dimension_semantics<arbitrary>], iteration_bounds = array<i64: 1, 1>, scalar_prefetch = 0 : i64, scratch_operands = 0 : i64, tpu.core_type = #tpu.core_type<tc>, window_params = [{transform_indices = @transform_0, window_bounds = array<i64: 8, 16>}, {transform_indices = @transform_1, window_bounds = array<i64: 8, 17, 16>}, {transform_indices = @transform_2, window_bounds = array<i64: 1, 8, 128>}]} {
    %c1_i32 = arith.constant 1 : i32
    %0 = arith.muli %arg0, %c1_i32 : i32
    %1 = arith.addi %0, %arg1 : i32
    %c0_i32 = arith.constant 0 : i32
    %2 = arith.cmpi eq, %arg1, %c0_i32 : i32
    %3 = arith.extui %2 : i1 to i32
    %c0_i32_0 = arith.constant 0 : i32
    %4 = arith.cmpi ne, %3, %c0_i32_0 : i32
    scf.if %4 {
      %cst = arith.constant 0.000000e+00 : f32
      %8 = vector.broadcast %cst : f32 to vector<1x8x128xf32>
      %c0 = arith.constant 0 : index
      %c0_3 = arith.constant 0 : index
      %c0_4 = arith.constant 0 : index
      %9 = vector.load %arg4[%c0, %c0_3, %c0_4] : memref<1x8x128xf32, #tpu.memory_space<vmem>>, vector<1x8x128xf32>
      tpu.vector_store %arg4[%c0, %c0_3, %c0_4], %8 {strides = array<i32>} : memref<1x8x128xf32, #tpu.memory_space<vmem>>, vector<1x8x128xf32>,
    } else {
    }
    %c1_i32_1 = arith.constant 1 : i32
    %5 = arith.cmpi slt, %1, %c1_i32_1 : i32
    %6 = arith.extui %5 : i1 to i32
    %c0_i32_2 = arith.constant 0 : i32
    %7 = arith.cmpi ne, %6, %c0_i32_2 : i32
    scf.if %7 {
      %c0 = arith.constant 0 : index
      %c0_3 = arith.constant 0 : index
      %8 = vector.load %arg2[%c0, %c0_3] : memref<8x16xf32, #tpu.memory_space<vmem>>, vector<8x16xf32>
      %9 = vector.shape_cast %8 : vector<8x16xf32> to vector<8x1x16xf32>
      %c0_4 = arith.constant 0 : index
      %c0_5 = arith.constant 0 : index
      %c0_6 = arith.constant 0 : index
      %10 = vector.load %arg3[%c0_4, %c0_5, %c0_6] : memref<8x17x16xf32, #tpu.memory_space<vmem>>, vector<8x17x16xf32>
      %11 = vector.broadcast %9 : vector<8x1x16xf32> to vector<8x17x16xf32>
      %12 = arith.subf %10, %11 : vector<8x17x16xf32>
      %c8_i32 = arith.constant 8 : i32
      %13 = arith.muli %1, %c8_i32 : i32
      %c8_i32_7 = arith.constant 8 : i32
      %14 = arith.addi %13, %c8_i32_7 : i32
      %c8_i32_8 = arith.constant 8 : i32
      %15 = arith.cmpi sle, %14, %c8_i32_8 : i32
      %16 = arith.extui %15 : i1 to i32
      %c0_i32_9 = arith.constant 0 : i32
      %17 = arith.cmpi ne, %16, %c0_i32_9 : i32
      scf.if %17 {
        %c0_13 = arith.constant 0 : index
        %c0_14 = arith.constant 0 : index
        %c0_15 = arith.constant 0 : index
        %22 = vector.load %arg4[%c0_13, %c0_14, %c0_15] : memref<1x8x128xf32, #tpu.memory_space<vmem>>, vector<1x8x128xf32>
        %23 = arith.mulf %12, %12 : vector<8x17x16xf32>
        %24 = vector.shape_cast %23 : vector<8x17x16xf32> to vector<1x8x17x16xf32>
        %cst = arith.constant dense<0.000000e+00> : vector<1xf32>
        %25 = vector.multi_reduction <add>, %24, %cst [1, 2, 3] : vector<1x8x17x16xf32> to vector<1xf32>
        %26 = vector.shape_cast %25 : vector<1xf32> to vector<1x1x1x1xf32>
        %27 = vector.extract %26[0, 0, 0, 0] : f32 from vector<1x1x1x1xf32>
        %28 = vector.broadcast %27 : f32 to vector<1x8x128xf32>
        %29 = arith.addf %22, %28 : vector<1x8x128xf32>
        %c0_16 = arith.constant 0 : index
        %c0_17 = arith.constant 0 : index
        %c0_18 = arith.constant 0 : index
        %30 = vector.load %arg4[%c0_16, %c0_17, %c0_18] : memref<1x8x128xf32, #tpu.memory_space<vmem>>, vector<1x8x128xf32>
        tpu.vector_store %arg4[%c0_16, %c0_17, %c0_18], %29 {strides = array<i32>} : memref<1x8x128xf32, #tpu.memory_space<vmem>>, vector<1x8x128xf32>,
      } else {
      }
      %c8_i32_10 = arith.constant 8 : i32
      %18 = arith.addi %13, %c8_i32_10 : i32
      %c8_i32_11 = arith.constant 8 : i32
      %19 = arith.cmpi sgt, %18, %c8_i32_11 : i32
      %20 = arith.extui %19 : i1 to i32
      %c0_i32_12 = arith.constant 0 : i32
      %21 = arith.cmpi ne, %20, %c0_i32_12 : i32
      scf.if %21 {
        %22 = tpu.iota {dimensions = array<i32: 0>} : vector<8x17x16xi32>
        %23 = vector.broadcast %13 : i32 to vector<8x17x16xi32>
        %24 = arith.addi %22, %23 : vector<8x17x16xi32>
        %c8_i32_13 = arith.constant 8 : i32
        %25 = vector.broadcast %c8_i32_13 : i32 to vector<8x17x16xi32>
        %26 = arith.cmpi slt, %24, %25 : vector<8x17x16xi32>
        %cst = arith.constant 0.000000e+00 : f32
        %27 = vector.broadcast %cst : f32 to vector<8x17x16xf32>
        %28 = arith.select %26, %12, %27 : vector<8x17x16xi1>, vector<8x17x16xf32>
        %c0_14 = arith.constant 0 : index
        %c0_15 = arith.constant 0 : index
        %c0_16 = arith.constant 0 : index
        %29 = vector.load %arg4[%c0_14, %c0_15, %c0_16] : memref<1x8x128xf32, #tpu.memory_space<vmem>>, vector<1x8x128xf32>
        %30 = arith.mulf %28, %28 : vector<8x17x16xf32>
        %31 = vector.shape_cast %30 : vector<8x17x16xf32> to vector<1x8x17x16xf32>
        %cst_17 = arith.constant dense<0.000000e+00> : vector<1xf32>
        %32 = vector.multi_reduction <add>, %31, %cst_17 [1, 2, 3] : vector<1x8x17x16xf32> to vector<1xf32>
        %33 = vector.shape_cast %32 : vector<1xf32> to vector<1x1x1x1xf32>
        %34 = vector.extract %33[0, 0, 0, 0] : f32 from vector<1x1x1x1xf32>
        %35 = vector.broadcast %34 : f32 to vector<1x8x128xf32>
        %36 = arith.addf %29, %35 : vector<1x8x128xf32>
        %c0_18 = arith.constant 0 : index
        %c0_19 = arith.constant 0 : index
        %c0_20 = arith.constant 0 : index
        %37 = vector.load %arg4[%c0_18, %c0_19, %c0_20] : memref<1x8x128xf32, #tpu.memory_space<vmem>>, vector<1x8x128xf32>
        tpu.vector_store %arg4[%c0_18, %c0_19, %c0_20], %36 {strides = array<i32>} : memref<1x8x128xf32, #tpu.memory_space<vmem>>, vector<1x8x128xf32>,
      } else {
      }
    } else {
    }
    return
  }
  func.func @transform_0(%arg0: i32, %arg1: i32) -> (i32, i32) {
    %c1_i32 = arith.constant 1 : i32
    %0 = arith.muli %arg0, %c1_i32 : i32
    %1 = arith.addi %0, %arg1 : i32
    %c0_i32 = arith.constant 0 : i32
    %2 = arith.minsi %1, %c0_i32 : i32
    %c0_i32_0 = arith.constant 0 : i32
    %c0_i32_1 = arith.constant 0 : i32
    return %2, %c0_i32_0 : i32, i32
  }
  func.func @transform_1(%arg0: i32, %arg1: i32) -> (i32, i32, i32) {
    %c1_i32 = arith.constant 1 : i32
    %0 = arith.muli %arg0, %c1_i32 : i32
    %1 = arith.addi %0, %arg1 : i32
    %c0_i32 = arith.constant 0 : i32
    %2 = arith.minsi %1, %c0_i32 : i32
    %c0_i32_0 = arith.constant 0 : i32
    %c0_i32_1 = arith.constant 0 : i32
    %c0_i32_2 = arith.constant 0 : i32
    return %2, %c0_i32_0, %c0_i32_1 : i32, i32, i32
  }
  func.func @transform_2(%arg0: i32, %arg1: i32) -> (i32, i32, i32) {
    %c0_i32 = arith.constant 0 : i32
    %c0_i32_0 = arith.constant 0 : i32
    %c0_i32_1 = arith.constant 0 : i32
    return %arg0, %c0_i32, %c0_i32_0 : i32, i32, i32
  }
}

</mosaic_0001>

<bundles_post_ra>
// kernel: tpu_custom_call.1
= control target key start
LH: loop header
LB: loop body
LE: loop exit
PB: predicated region body
PF: predicated region fallthrough
CT: control target
= control target key end

     0   :  { %v90_v0 = vlaneseq  ;;  %v499_v1 = vmov 1966171168   ;;  %s636_s0 = inlined_call_operand.vmem [shape: f32[8,16], index: 0, kind: input, shape index: {}]   ;;  %s637_s1 = inlined_call_operand.vmem [shape: f32[8,17,16], index: 1, kind: input, shape index: {}]   ;;  %s638_s2 = inlined_call_operand.hbm [shape: f32[1,8,128], index: 2, kind: output, shape index: {}]  }
   0x1   :  { %v88_v2 = vunpack.c.l.s4 %v499_v1  ;;  %v84_v5 = vld [vmem:[%s636_s0] sm:$0xff] }
   0x2   :  { %v91_v3 = vshrl.u32 %v90_v0, 7 }
   0x3   :  { %v89_v4 = vunpack.c.0.s8 %v88_v2 }
   0x5   :  { %v519_v6 = vsub.s32 %v89_v4, %v91_v3 }
   0x7   :  { %v93_v7 = vrot.slane %v84_v5, %v519_v6 }
   0x8   :  { %7 = vsyncpa [#allocation3], 0  ;;  %v523_v10 = vsub.s32 0, %v91_v3  ;;  %v135_v13 = vld [vmem:[%s637_s1] sm:$0xff]  ;;  %v136_v14 = vld [vmem:[%s637_s1 + $0x8] sm:$0xff]  ;;  %v86_v24 = vcombine.high %v84_v5, %v84_v5  ;;  %vm254_vm0 = vcmask 130048  }
   0x9   :  { %v101_v8 = vcombine.high %v93_v7, %v93_v7  ;;  %v109_v9 = vrot.slane %v93_v7, %v519_v6  ;;  %v137_v15 = vld [vmem:[%s637_s1 + $0x10] sm:$0x1]  ;;  %v138_v18 = vld [vmem:[%s637_s1 + $0x18] sm:$0xff]  ;;  %v139_v22 = vld [vmem:[%s637_s1 + $0x20] sm:$0xff]  ;;  %vm258_vm1 = vcmask 122880  }
   0xa   :  { %v140_v25 = vld [vmem:[%s637_s1 + $0x28] sm:$0x1]  ;;  %v141_v27 = vld [vmem:[%s637_s1 + $0x30] sm:$0xff]  ;;  %v100_v35 = vrot.slane %v86_v24, %v519_v6  ;;  %v142_v36 = vld [vmem:[%s637_s1 + $0x38] sm:$0xff] }
   0xb   :  { %v123_v11 = vrot.slane %v101_v8, %v519_v6  ;;  %v162_v12 = vrot.slane %v109_v9, %v523_v10  ;;  %v131_v17 = vcombine.high %v109_v9, %v109_v9  ;;  %v143_v42 = vld [vmem:[%s637_s1 + $0x40] sm:$0x1]  ;;  %v144_v48 = vld [vmem:[%s637_s1 + $0x48] sm:$0xff]  ;;  %v145_v54 = vld [vmem:[%s637_s1 + $0x50] sm:$0xff] }
   0xc   :  { %v116_v50 = vrot.slane %v100_v35, %v519_v6  ;;  %v102_v56 = vcombine.high %v100_v35, %v100_v35  ;;  %v146_v60 = vld [vmem:[%s637_s1 + $0x58] sm:$0x1]  ;;  %v147_v2 = vld [vmem:[%s637_s1 + $0x60] sm:$0xff]  ;;  %v148_v9 = vld [vmem:[%s637_s1 + $0x68] sm:$0xff] }
   0xd   :  { %v166_v16 = vrot.slane %v123_v11, %v523_v10  ;;  %v199_v19 = vsub.f32 %v135_v13, %v162_v12  ;;  %v200_v20 = vsub.f32 %v136_v14, %v162_v12  ;;  %v201_v21 = vsub.f32 %v137_v15, %v162_v12  ;;  %v149_v15 = vld [vmem:[%s637_s1 + $0x70] sm:$0x1] }
   0xe   :  { %v170_v26 = vrot.slane %v131_v17, %v523_v10  ;;  %v133_v32 = vcombine.high %v123_v11, %v123_v11  ;;  %v178_v62 = vrot.slane %v116_v50, %v523_v10  ;;  %v130_v4 = vrot.slane %v102_v56, %v519_v6 }
   0xf   :  { %v202_v23 = vsub.f32 %v138_v18, %v166_v16  ;;  %v203_v28 = vsub.f32 %v139_v22, %v166_v16  ;;  %v230_v29 = vmul.f32 %v199_v19, %v199_v19  ;;  %v231_v30 = vmul.f32 %v200_v20, %v200_v20  ;;  %v150_v20 = vld [vmem:[%s637_s1 + $0x78] sm:$0xff] }
  0x10   :  { %v232_v31 = vmul.f32 %v201_v21, %v201_v21  ;;  %v204_v33 = vsub.f32 %v140_v25, %v166_v16  ;;  %v205_v37 = vsub.f32 %v141_v27, %v170_v26  ;;  %v174_v44 = vrot.slane %v133_v32, %v523_v10 }
  0x11   :  { %v233_v34 = vmul.f32 %v202_v23, %v202_v23  ;;  %v234_v38 = vmul.f32 %v203_v28, %v203_v28  ;;  %v255_v39 = vsel %vm254_vm0, %v230_v29, 0.0  ;;  %v256_v40 = vsel %vm254_vm0, %v231_v30, 0.0 }
  0x12   :  { %v259_v41 = vsel %vm258_vm1, %v232_v31, 0.0  ;;  %v257_v43 = vadd.f32 %v256_v40, %v255_v39  ;;  %v206_v45 = vsub.f32 %v142_v36, %v170_v26  ;;  %v235_v46 = vmul.f32 %v204_v33, %v204_v33  ;;  %v152_v31 = vld [vmem:[%s637_s1 + $0x88] sm:$0x1] }
  0x13   :  { %v261_v47 = vsel %vm254_vm0, %v233_v34, 0.0  ;;  %v207_v51 = vsub.f32 %v143_v42, %v170_v26  ;;  %v236_v52 = vmul.f32 %v205_v37, %v205_v37  ;;  %v263_v53 = vsel %vm254_vm0, %v234_v38, 0.0  ;;  %v151_v26 = vld [vmem:[%s637_s1 + $0x80] sm:$0xff]  ;;  %v153_v37 = vld [vmem:[%s637_s1 + $0x90] sm:$0xff] }
  0x14   :  { %v260_v49 = vadd.f32 %v259_v41, %v257_v43  ;;  %v208_v57 = vsub.f32 %v144_v48, %v174_v44  ;;  %v237_v58 = vmul.f32 %v206_v45, %v206_v45  ;;  %v265_v59 = vsel %vm258_vm1, %v235_v46, 0.0  ;;  %v154_v43 = vld [vmem:[%s637_s1 + $0x98] sm:$0xff]  ;;  %v155_v48 = vld [vmem:[%s637_s1 + $0xa0] sm:$0x1] }
  0x15   :  { %v209_v63 = vsub.f32 %v145_v54, %v174_v44  ;;  %v238_v0 = vmul.f32 %v207_v51, %v207_v51  ;;  %v267_v1 = vsel %vm254_vm0, %v236_v52, 0.0  ;;  %v210_v5 = vsub.f32 %v146_v60, %v174_v44  ;;  %v156_v54 = vld [vmem:[%s637_s1 + $0xa8] sm:$0xff] }
  0x16   :  { %v262_v55 = vadd.f32 %v261_v47, %v260_v49  ;;  %v239_v7 = vmul.f32 %v208_v57, %v208_v57  ;;  %v269_v8 = vsel %vm254_vm0, %v237_v58, 0.0  ;;  %v211_v12 = vsub.f32 %v147_v2, %v178_v62 }
  0x17   :  { %v240_v13 = vmul.f32 %v209_v63, %v209_v63  ;;  %v271_v14 = vsel %vm258_vm1, %v238_v0, 0.0  ;;  %v182_v6 = vrot.slane %v130_v4, %v523_v10  ;;  %v212_v17 = vsub.f32 %v148_v9, %v178_v62  ;;  %v158_v63 = vld [vmem:[%s637_s1 + $0xb8] sm:$0x1] }
  0x18   :  { %v264_v61 = vadd.f32 %v263_v53, %v262_v55  ;;  %v241_v18 = vmul.f32 %v210_v5, %v210_v5  ;;  %v273_v19 = vsel %vm254_vm0, %v239_v7, 0.0  ;;  %v132_v22 = vcombine.high %v116_v50, %v116_v50 }
  0x19   :  { %v213_v23 = vsub.f32 %v149_v15, %v178_v62  ;;  %v242_v24 = vmul.f32 %v211_v12, %v211_v12  ;;  %v275_v25 = vsel %vm254_vm0, %v240_v13, 0.0  ;;  %v214_v28 = vsub.f32 %v150_v20, %v182_v6 }
  0x1a   :  { %v266_v3 = vadd.f32 %v265_v59, %v264_v61  ;;  %v243_v29 = vmul.f32 %v212_v17, %v212_v17  ;;  %v277_v30 = vsel %vm258_vm1, %v241_v18, 0.0  ;;  %v186_v33 = vrot.slane %v132_v22, %v523_v10  ;;  %v157_v59 = vld [vmem:[%s637_s1 + $0xb0] sm:$0xff]  ;;  %s500_s1 = smov [#allocation2]  }
  0x1b   :  { %v215_v34 = vsub.f32 %v151_v26, %v182_v6  ;;  %v244_v35 = vmul.f32 %v213_v23, %v213_v23  ;;  %v279_v36 = vsel %vm254_vm0, %v242_v24, 0.0  ;;  %v134_v39 = vcombine.high %v130_v4, %v130_v4  ;;  %s451_s29 = sshll.u32 %s500_s1, 4  ;;  %s452_s29 = int_to_ptr.vmem [resolvable:$true] %s451_s29 }
  0x1c   :  { %v268_v11 = vadd.f32 %v267_v1, %v266_v3  ;;  %v216_v40 = vsub.f32 %v152_v31, %v182_v6  ;;  %v245_v41 = vmul.f32 %v214_v28, %v214_v28  ;;  %v281_v42 = vsel %vm254_vm0, %v243_v29, 0.0  ;;  %s477_s3 = scalar_lea.vmem %s452_s29, 128  ;;  %p482_p1 = scmp.lt.s32.totalorder %s452_s29, %s452_s29 }
  0x1d   :  { %v217_v45 = vsub.f32 %v153_v37, %v186_v33  ;;  %v246_v46 = vmul.f32 %v215_v34, %v215_v34  ;;  %v283_v47 = vsel %vm258_vm1, %v244_v35, 0.0  ;;  %v190_v50 = vrot.slane %v134_v39, %v523_v10  ;;  %p478_p0 = scmp.ne.s32.totalorder %s452_s29, %s477_s3  ;;  %p483_p2 = scmp.lt.s32.totalorder %s477_s3, %s477_s3 }
  0x1e   :  { %v270_v16 = vadd.f32 %v269_v8, %v268_v11  ;;  %v218_v51 = vsub.f32 %v154_v43, %v186_v33  ;;  %v247_v52 = vmul.f32 %v216_v40, %v216_v40  ;;  %v285_v53 = vsel %vm254_vm0, %v245_v41, 0.0 }
  0x1f   :  { %v219_v56 = vsub.f32 %v155_v48, %v186_v33  ;;  %v248_v57 = vmul.f32 %v217_v45, %v217_v45  ;;  %v287_v58 = vsel %vm254_vm0, %v246_v46, 0.0  ;;  %v220_v61 = vsub.f32 %v156_v54, %v190_v50  ;;  %p484_p3 = por %p483_p2, %p482_p1 }
  0x20   :  { %v272_v21 = vadd.f32 %v271_v14, %v270_v16  ;;  %v249_v10 = vmul.f32 %v218_v51, %v218_v51  ;;  %v289_v62 = vsel %vm258_vm1, %v247_v52, 0.0  ;;  %v221_v1 = vsub.f32 %v157_v59, %v190_v50 }
  0x21   :  { %v250_v2 = vmul.f32 %v219_v56, %v219_v56  ;;  %v291_v3 = vsel %vm254_vm0, %v248_v57, 0.0  ;;  %v222_v5 = vsub.f32 %v158_v63, %v190_v50  ;;  %v251_v7 = vmul.f32 %v220_v61, %v220_v61  ;;  %p485_p4 = pnand %p484_p3, %p478_p0 }
  0x22   :  { %v274_v27 = vadd.f32 %v273_v19, %v272_v21  ;;  %v293_v8 = vsel %vm254_vm0, %v249_v10, 0.0  ;;  %v252_v11 = vmul.f32 %v221_v1, %v221_v1 }
  0x23   :  { %v295_v12 = vsel %vm258_vm1, %v250_v2, 0.0  ;;  %v253_v14 = vmul.f32 %v222_v5, %v222_v5  ;;  %v297_v15 = vsel %vm254_vm0, %v251_v7, 0.0 }
  0x24   :  { %v276_v32 = vadd.f32 %v275_v25, %v274_v27  ;;  %v299_v6 = vsel %vm254_vm0, %v252_v11, 0.0 }
  0x25   :  { %v301_v18 = vsel %vm258_vm1, %v253_v14, 0.0 }
  0x26   :  { %v278_v38 = vadd.f32 %v277_v30, %v276_v32 }
  0x28   :  { %v280_v44 = vadd.f32 %v279_v36, %v278_v38 }
  0x2a   :  { %v282_v49 = vadd.f32 %v281_v42, %v280_v44 }
  0x2c   :  { %v284_v55 = vadd.f32 %v283_v47, %v282_v49 }
  0x2e   :  { %v286_v60 = vadd.f32 %v285_v53, %v284_v55 }
  0x30   :  { %v288_v0 = vadd.f32 %v287_v58, %v286_v60 }
  0x32   :  { %v290_v4 = vadd.f32 %v289_v62, %v288_v0 }
  0x34   :  { %v292_v9 = vadd.f32 %v291_v3, %v290_v4 }
  0x36   :  { %v294_v13 = vadd.f32 %v293_v8, %v292_v9 }
  0x38   :  { %v296_v16 = vadd.f32 %v295_v12, %v294_v13 }
  0x3a   :  { %v298_v17 = vadd.f32 %v297_v15, %v296_v16 }
  0x3c   :  { %v300_v19 = vadd.f32 %v299_v6, %v298_v17 }
  0x3e   :  { %v302_v20 = vadd.f32 %v301_v18, %v300_v19 }
  0x40   :  { %303 = vadd.xlane.f32.xlu0 %v302_v20 }
  0xc9   :  { %v304_v21 = vpop.xlane.xlu0 %303 }
  0xca   :  { %v305_v22 = vrot.slane %v304_v21, 4 }
  0xcc   :  { %v306_v23 = vadd.f32 %v305_v22, %v304_v21 }
  0xce   :  { %v307_v24 = vrot.slane %v306_v23, 2 }
  0xd0   :  { %v308_v25 = vadd.f32 %v307_v24, %v306_v23 }
  0xd2   :  { %v309_v26 = vrot.slane %v308_v25, 1 }
  0xd4   :  { %v310_v27 = vadd.f32 %v309_v26, %v308_v25 }
  0xd6   :  { %471 = vpush %v310_v27 }
 0x107   :  { %s472_s30 = spop %471 }
 0x108   :  { %v312_v28 = vstv %s472_s30 }
 0x109   :  { %314 = vst [vmem:[#allocation2] sm:$0xff] %v312_v28 }
 0x10a   :  { %488 = shalt.err (!%p485_p4)
}
 0x10b   :  { %454 = dma.vmem_to_hbm [thread:$0]  %s452_s29, 128, %s638_s2, [#allocation3]  }
 0x10c   :  { %497 = dma.done.wait [#allocation3], 128  }
 0x10d   :  { %498 = vsyncadd [#allocation3], 4294967168 }
 0x10e   :  { %458 = vsyncpa [#allocation3], 1 }

</bundles_post_ra>
